<compile_context>
chip_gen: v7x
topology: tpu7x:2x2x1
jax: 0.10.0
libtpu: 0.0.40
codegen_flags: <defaults>
</compile_context>

<pallas_src>
import functools

import jax
import jax.numpy as jnp
from jax.experimental import pallas as pl
from jax.experimental.pallas import tpu as pltpu


def _gem_kernel(p_ref, x_ref, o_ref, acc_ref, *, eps, hw_total, hw_tile):
    """One (n, k) grid step.

    p_ref   : SMEM (1,)             learnable exponent p
    x_ref   : VMEM (1, hw_tile, C)  channels-on-lanes slab of the feature map
    o_ref   : VMEM (1, 1, C)        pooled output row (lane-dense)
    acc_ref : VMEM (1, C) f32       running sum of clamp(x, eps)^p over H*W
    """
    k = pl.program_id(1)
    nk = pl.num_programs(1)

    @pl.when(k == 0)
    def _():
        acc_ref[...] = jnp.zeros_like(acc_ref)

    p = p_ref[0]
    # Keep the input dtype through the HBM->VMEM load; cast per-tile, f32 acc.
    x = x_ref[0].astype(jnp.float32)          # (hw_tile, C)
    x = jnp.maximum(x, eps)                   # clamp(min=eps), so x > 0
    # x^p with a runtime exponent: exp(p * log(x)).
    # TODO(synk): add a VALU fast path (x*x*x) under pl.when(p == 3) to relieve
    # the single EUP when p is the canonical integer value.
    xp = jnp.exp(p * jnp.log(x))

    # Mask rows past the true H*W (padded tail of the last H*W block).
    if hw_total % hw_tile != 0:
        row = jax.lax.broadcasted_iota(jnp.int32, xp.shape, 0) + k * hw_tile
        xp = jnp.where(row < hw_total, xp, 0.0)

    acc_ref[...] += jnp.sum(xp, axis=0, keepdims=True)   # per-channel partial sum

    @pl.when(k == nk - 1)
    def _():
        m = acc_ref[...] * (1.0 / float(hw_total))       # mean over TRUE H*W
        y = jnp.exp(jnp.log(m) / p)                      # (...)^(1/p)
        o_ref[0] = y.astype(o_ref.dtype)


def _choose_hw_tile(hw, c, itemsize):
    """Largest multiple-of-8 H*W tile s.t. the double-buffered input block stays
    within a conservative VMEM budget (safe for v7x's smaller VMEM)."""
    c_pad = -(-c // 128) * 128                 # lane padding of the C axis
    budget = 8 * 1024 * 1024                   # bytes for 2x (tile, C_pad) buffers
    max_rows = max(8, budget // (2 * c_pad * itemsize))
    if hw <= max_rows:
        return hw                              # single block covers full H*W
    return max(8, (max_rows // 8) * 8)


def gem(x, p, eps=1e-6):
    """GeM pooling. x: (N, C, H, W), p: (1,). Returns (N, C, 1, 1)."""
    N, C, H, W = x.shape
    HW = H * W

    # channels-on-lanes: (N, C, H, W) -> (N, H*W, C)
    x3 = jnp.transpose(x, (0, 2, 3, 1)).reshape(N, HW, C)
    p = p.astype(jnp.float32)

    thw = _choose_hw_tile(HW, C, x.dtype.itemsize)
    nk = pl.cdiv(HW, thw)

    kernel = functools.partial(
        _gem_kernel, eps=float(eps), hw_total=HW, hw_tile=thw
    )

    out = pl.pallas_call(
        kernel,
        out_shape=jax.ShapeDtypeStruct((N, 1, C), x.dtype),
        grid=(N, nk),
        in_specs=[
            pl.BlockSpec(memory_space=pltpu.SMEM),               # p (scalar)
            pl.BlockSpec((1, thw, C), lambda n, k: (n, k, 0)),   # x tile
        ],
        out_specs=pl.BlockSpec((1, 1, C), lambda n, k: (n, 0, 0)),
        scratch_shapes=[pltpu.VMEM((1, C), jnp.float32)],
        compiler_params=pltpu.CompilerParams(
            dimension_semantics=("parallel", "arbitrary"),
        ),
        cost_estimate=pl.CostEstimate(
            flops=5 * N * HW * C,
            transcendentals=2 * N * HW * C + 2 * N * C,
            bytes_accessed=x3.size * x3.dtype.itemsize
            + N * C * x3.dtype.itemsize,
        ),
    )(p, x3)

    return out.reshape(N, C, 1, 1)


def gem_reference(x, p, eps=1e-6):
    xf = x.astype(jnp.float32)
    xc = jnp.maximum(xf, eps)
    m = jnp.mean(xc ** p[0], axis=(-2, -1), keepdims=True)
    return (m ** (1.0 / p[0])).astype(x.dtype)


if __name__ == "__main__":
    key = jax.random.PRNGKey(0)
    N, C, H, W = 2, 4, 16, 16
    x = jax.random.normal(key, (N, C, H, W), dtype=jnp.float32)

    # Deterministic parameter init (as in GeM.__init__: p = ones(1) * 3)
    p = jnp.ones((1,), dtype=jnp.float32) * 3.0
    eps = 1e-6

    y = gem(x, p, eps)
    jax.block_until_ready(y)

    y_ref = gem_reference(x, p, eps)
    assert y.shape == (N, C, 1, 1)
    assert jnp.allclose(y, y_ref, rtol=1e-4, atol=1e-5), (y, y_ref)

    print("KERNEL_OK")
</pallas_src>

<mosaic_0001>
module attributes {stable_mosaic.version = 11 : i64} {
  func.func @_gem_kernel(%arg0: i32, %arg1: i32, %arg2: memref<1xf32, #tpu.memory_space<smem>>, %arg3: memref<1x256x4xf32, #tpu.memory_space<vmem>>, %arg4: memref<1x1x4xf32, #tpu.memory_space<vmem>>, %arg5: memref<1x4xf32, #tpu.memory_space<vmem>>) attributes {dimension_semantics = [#tpu.dimension_semantics<parallel>, #tpu.dimension_semantics<arbitrary>], iteration_bounds = array<i64: 2, 1>, scalar_prefetch = 0 : i64, scratch_operands = 1 : i64, tpu.core_type = #tpu.core_type<tc>, window_params = [{transform_indices = @transform_0, window_bounds = array<i64: 1>}, {transform_indices = @transform_1, window_bounds = array<i64: 1, 256, 4>}, {transform_indices = @transform_2, window_bounds = array<i64: 1, 1, 4>}]} {
    %c0_i32 = arith.constant 0 : i32
    %0 = arith.cmpi eq, %arg1, %c0_i32 : i32
    %1 = arith.extui %0 : i1 to i32
    %c0_i32_0 = arith.constant 0 : i32
    %2 = arith.cmpi ne, %1, %c0_i32_0 : i32
    scf.if %2 {
      %cst_11 = arith.constant 0.000000e+00 : f32
      %20 = vector.broadcast %cst_11 : f32 to vector<1x4xf32>
      %c0_12 = arith.constant 0 : index
      %c0_13 = arith.constant 0 : index
      %21 = vector.load %arg5[%c0_12, %c0_13] : memref<1x4xf32, #tpu.memory_space<vmem>>, vector<1x4xf32>
      tpu.vector_store %arg5[%c0_12, %c0_13], %20 {strides = array<i32>} : memref<1x4xf32, #tpu.memory_space<vmem>>, vector<1x4xf32>,
    } else {
    }
    %c0 = arith.constant 0 : index
    %3 = memref.load %arg2[%c0] : memref<1xf32, #tpu.memory_space<smem>>
    %c0_1 = arith.constant 0 : index
    %c0_2 = arith.constant 0 : index
    %c0_3 = arith.constant 0 : index
    %4 = vector.load %arg3[%c0_1, %c0_2, %c0_3] : memref<1x256x4xf32, #tpu.memory_space<vmem>>, vector<1x256x4xf32>
    %5 = vector.shape_cast %4 : vector<1x256x4xf32> to vector<256x4xf32>
    %cst = arith.constant 9.99999997E-7 : f32
    %6 = vector.broadcast %cst : f32 to vector<256x4xf32>
    %7 = arith.maximumf %5, %6 : vector<256x4xf32>
    %8 = math.log %7 : vector<256x4xf32>
    %9 = vector.broadcast %3 : f32 to vector<256x4xf32>
    %10 = arith.mulf %9, %8 : vector<256x4xf32>
    %11 = math.exp %10 : vector<256x4xf32>
    %c0_4 = arith.constant 0 : index
    %c0_5 = arith.constant 0 : index
    %12 = vector.load %arg5[%c0_4, %c0_5] : memref<1x4xf32, #tpu.memory_space<vmem>>, vector<1x4xf32>
    %cst_6 = arith.constant dense<0.000000e+00> : vector<4xf32>
    %13 = vector.multi_reduction <add>, %11, %cst_6 [0] : vector<256x4xf32> to vector<4xf32>
    %14 = vector.shape_cast %13 : vector<4xf32> to vector<1x4xf32>
    %15 = arith.addf %12, %14 : vector<1x4xf32>
    %c0_7 = arith.constant 0 : index
    %c0_8 = arith.constant 0 : index
    %16 = vector.load %arg5[%c0_7, %c0_8] : memref<1x4xf32, #tpu.memory_space<vmem>>, vector<1x4xf32>
    tpu.vector_store %arg5[%c0_7, %c0_8], %15 {strides = array<i32>} : memref<1x4xf32, #tpu.memory_space<vmem>>, vector<1x4xf32>,
    %c0_i32_9 = arith.constant 0 : i32
    %17 = arith.cmpi eq, %arg1, %c0_i32_9 : i32
    %18 = arith.extui %17 : i1 to i32
    %c0_i32_10 = arith.constant 0 : i32
    %19 = arith.cmpi ne, %18, %c0_i32_10 : i32
    scf.if %19 {
      %c0_11 = arith.constant 0 : index
      %c0_12 = arith.constant 0 : index
      %20 = vector.load %arg5[%c0_11, %c0_12] : memref<1x4xf32, #tpu.memory_space<vmem>>, vector<1x4xf32>
      %cst_13 = arith.constant 3.906250e-03 : f32
      %21 = vector.broadcast %cst_13 : f32 to vector<1x4xf32>
      %22 = arith.mulf %20, %21 : vector<1x4xf32>
      %23 = math.log %22 : vector<1x4xf32>
      %24 = vector.broadcast %3 : f32 to vector<1x4xf32>
      %25 = arith.divf %23, %24 : vector<1x4xf32>
      %26 = math.exp %25 : vector<1x4xf32>
      %c0_14 = arith.constant 0 : index
      %c0_15 = arith.constant 0 : index
      %c0_16 = arith.constant 0 : index
      %27 = vector.load %arg4[%c0_14, %c0_15, %c0_16] : memref<1x1x4xf32, #tpu.memory_space<vmem>>, vector<1x1x4xf32>
      %28 = vector.shape_cast %27 : vector<1x1x4xf32> to vector<1x4xf32>
      %29 = vector.shape_cast %26 : vector<1x4xf32> to vector<1x1x4xf32>
      tpu.vector_store %arg4[%c0_14, %c0_15, %c0_16], %29 {strides = array<i32>} : memref<1x1x4xf32, #tpu.memory_space<vmem>>, vector<1x1x4xf32>,
    } else {
    }
    return
  }
  func.func @transform_0(%arg0: i32, %arg1: i32) -> i32 {
    %c0_i32 = arith.constant 0 : i32
    %c0_i32_0 = arith.constant 0 : i32
    return %c0_i32 : i32
  }
  func.func @transform_1(%arg0: i32, %arg1: i32) -> (i32, i32, i32) {
    %c0_i32 = arith.constant 0 : i32
    %c0_i32_0 = arith.constant 0 : i32
    return %arg0, %arg1, %c0_i32 : i32, i32, i32
  }
  func.func @transform_2(%arg0: i32, %arg1: i32) -> (i32, i32, i32) {
    %c0_i32 = arith.constant 0 : i32
    %c0_i32_0 = arith.constant 0 : i32
    %c0_i32_1 = arith.constant 0 : i32
    return %arg0, %c0_i32, %c0_i32_0 : i32, i32, i32
  }
}

</mosaic_0001>

<bundles_post_ra>
// kernel: tpu_custom_call.1
= control target key start
LH: loop header
LB: loop body
LE: loop exit
PB: predicated region body
PF: predicated region fallthrough
CT: control target
= control target key end

     0   :  { %s1087_s0 = inlined_call_operand.<no memory space> [shape: f32[1], index: 0, kind: input, shape index: {}]   ;;  %s1088_s1 = inlined_call_operand.vmem [shape: f32[2,256,4], index: 1, kind: input, shape index: {}]   ;;  %s1089_s2 = inlined_call_operand.hbm [shape: f32[2,1,4], index: 2, kind: output, shape index: {}]  }
   0x1   :  { %7 = sst [smem:[#allocation3]] %s1087_s0 }
   0x2   :  { %8 = vsyncpa [#allocation5], 0 }
   0x3   :  { %10 = vsyncpa [#allocation5 + $0x1], 0  ;;  %s871_s11 = smov 0   ;;  %s873_s12 = smov 0  }
   0x4   :  { %s875_s13 = smov 0   ;;  %s877_s14 = smov 0  }
   0x5   :  { %s879_s15 = smov 0   ;;  %s881_s16 = smov 0  }
   0x6 LB: > { %s570_s0 = sadd.s32 4294967295, %s849_s16   ;;  %s571_s17 = sadd.s32 4294967294, %s849_s16   ;;  %s849_s16 = sphi %s881_s16, %s16_s16   ;;  %s845_s15 = sphi %s879_s15, %s1096_s15   ;;  %s841_s14 = sphi %s877_s14, %s1095_s14   ;;  %s837_s13 = sphi %s875_s13, %s1094_s13   ;;  %s833_s12 = sphi %s873_s12, %s1093_s12   ;;  %s829_s11 = sphi %s871_s11, %s1092_s11  }
   0x7   : > { %s28_s18 = sadd.s32 1, %s845_s15  ;;  %s84_s19 = sadd.s32 1, %s837_s13 }
   0x8   : > { %p30_p0 = scmp.ge.s32.totalorder %s28_s18, 2  ;;  %p94_p1 = scmp.ne.s32.totalorder %s837_s13, %s833_s12 }
   0x9   : > { %p95_p2 = scmp.eq.s32.totalorder %s570_s0, 1  ;;  %p100_p3 = scmp.ne.s32.totalorder %s833_s12, %s829_s11 }
   0xa   : > { %s1098_s18 = smov (%p30_p0, %s28_s18), 0  ;;  %p101_p5 = scmp.eq.s32.totalorder %s571_s17, 1 }
   0xb   : > { %p911_p4 = por %p95_p2, %p94_p1  ;;  %s81_s21 = ssub.s32 %s845_s15, %s1098_s18 }
   0xc   : > { %p574_p6 = scmp.ge.s32.totalorder %s849_s16, 1  ;;  %p82_p7 = scmp.eq.s32.totalorder %s81_s21, 0 }
   0xd   : > { %p918_p8 = por %p101_p5, %p100_p3  ;;  %p135_p9 = scmp.lt.s32.totalorder %s849_s16, 3 }
   0xe   : > { %s924_s23 = scalar_select %p82_p7, %s837_s13, %s84_s19  }
   0xf   : > { %p136_p10 = pnand %p574_p6, %p135_p9 }
  0x10   : > { %p161_p11 = scmp.lt.s32.totalorder (!%p136_p10), %s841_s14, 1  ;;  %vm174_vm0 = vcmask (!%p136_p10), 24576   ;;  %v851_v0 = vmov (!%p136_p10), 0.0   ;;  %s176_s29 = sld [smem:[#allocation3]] (!%p136_p10)  ;;  %vm403_vm1 = vcmask (!%p136_p10), 31744  }
  0x11   : > { %139 = sbr.rel (%p136_p10) target bundleno = 189 (0xbd), region = 28  ;;  %175 = vst.msk [vmem:[#allocation2] sm:$0x1] (!%p136_p10), %vm174_vm0, %v851_v0  ;;  %s158_s30 = sand.u32 (!%p136_p10), 1, %s833_s12  }
  0x12   : > { %s577_s3 = sshll.u32 (!%p136_p10), %s841_s14, 4  ;;  %s159_s4 = scalar_lea.vmem (!%p136_p10), [#allocation4], %s158_s30 }
  0x13   : > { %s501_s5 = sshll.u32 (!%p136_p10), %s159_s4, 4  ;;  %s1039_s8 = scalar_lea.hbm (!%p136_p10), %s1089_s2, %s577_s3  ;;  %s1041_s5 = int_to_ptr.vmem [resolvable:$true] %s501_s5 }
  0x14   : > { %s489_s9 = scalar_lea.sflag (!%p136_p10), [#allocation5], %s158_s30  ;;  %s771_s10 = scalar_lea.vmem (!%p136_p10), %s1041_s5, 16 }
  0x15   : > { %p772_p12 = scmp.ne.s32.totalorder (!%p136_p10), %s1041_s5, %s771_s10 }
  0x16   : > { %v948_v32 = vstv (!%p136_p10), %s176_s29 }
  0x17   : > { %p773_p13 = pnand (!%p136_p10), %p772_p12, %p911_p4 }
  0x18   : > { %s162_s24 = scalar_select %p161_p11, %s841_s14, 1 }
  0x19   : > { %p774_p0 = pneg %p773_p13  ;;  %s852_s14 = smov [#allocation4]  }
  0x1a   : > { %s580_s25 = sshll.u32 %s162_s24, 8  ;;  %s775_s0 = sshll.u32 %s852_s14, 4  ;;  %s776_s0 = int_to_ptr.vmem [resolvable:$false] %s775_s0 }
  0x1b   : > { %s932_s28 = scalar_lea.vmem %s1088_s1, %s580_s25  ;;  %s777_s17 = scalar_lea.vmem %s776_s0, 32 }
  0x1c   : > { %v177_v1 = vld [vmem:[%s932_s28] sm:$0xff]  ;;  %v178_v2 = vld [vmem:[%s932_s28 + $0x8] sm:$0xff]  ;;  %v179_v3 = vld [vmem:[%s932_s28 + $0x10] sm:$0xff]  ;;  %p778_p1 = scmp.lt.s32.totalorder %s1041_s5, %s776_s0  ;;  %p779_p2 = scmp.lt.s32.totalorder %s777_s17, %s771_s10 }
  0x1d   : > { %v209_v4 = vmax.f32 %v177_v1, 1e-06  ;;  %v180_v5 = vld [vmem:[%s932_s28 + $0x18] sm:$0xff]  ;;  %v210_v6 = vmax.f32 %v178_v2, 1e-06  ;;  %v181_v8 = vld [vmem:[%s932_s28 + $0x20] sm:$0xff] }
  0x1e   : > { %v211_v7 = vmax.f32 %v179_v3, 1e-06  ;;  %v212_v9 = vmax.f32 %v180_v5, 1e-06  ;;  %v182_v10 = vld [vmem:[%s932_s28 + $0x28] sm:$0xff]  ;;  %v183_v12 = vld [vmem:[%s932_s28 + $0x30] sm:$0xff]  ;;  %p780_p3 = por %p779_p2, %p778_p1 }
  0x1f   : > { %637 = vlog2.f32 %v209_v4  ;;  %v213_v11 = vmax.f32 %v181_v8, 1e-06  ;;  %v214_v13 = vmax.f32 %v182_v10, 1e-06  ;;  %v184_v14 = vld [vmem:[%s932_s28 + $0x38] sm:$0xff]  ;;  %v185_v16 = vld [vmem:[%s932_s28 + $0x40] sm:$0xff] }
  0x20   : > { %639 = vlog2.f32 %v210_v6  ;;  %v215_v15 = vmax.f32 %v183_v12, 1e-06  ;;  %v216_v17 = vmax.f32 %v184_v14, 1e-06  ;;  %v186_v18 = vld [vmem:[%s932_s28 + $0x48] sm:$0xff]  ;;  %v187_v22 = vld [vmem:[%s932_s28 + $0x50] sm:$0xff]  ;;  %p781_p5 = pnand %p780_p3, %p774_p0 }
  0x21   : > { %641 = vlog2.f32 %v211_v7  ;;  %v217_v20 = vmax.f32 %v185_v16, 1e-06  ;;  %v188_v24 = vld [vmem:[%s932_s28 + $0x58] sm:$0xff]  ;;  %v218_v25 = vmax.f32 %v186_v18, 1e-06  ;;  %v189_v26 = vld [vmem:[%s932_s28 + $0x60] sm:$0xff] }
  0x22   : > { %643 = vlog2.f32 %v212_v9  ;;  %v190_v29 = vld [vmem:[%s932_s28 + $0x68] sm:$0xff]  ;;  %v219_v30 = vmax.f32 %v187_v22, 1e-06  ;;  %v191_v33 = vld [vmem:[%s932_s28 + $0x70] sm:$0xff]  ;;  %v220_v34 = vmax.f32 %v188_v24, 1e-06 }
  0x23   : > { %645 = vlog2.f32 %v213_v11  ;;  %v192_v37 = vld [vmem:[%s932_s28 + $0x78] sm:$0xff]  ;;  %v221_v38 = vmax.f32 %v189_v26, 1e-06  ;;  %v193_v39 = vld [vmem:[%s932_s28 + $0x80] sm:$0xff]  ;;  %v222_v40 = vmax.f32 %v190_v29, 1e-06 }
  0x24   : > { %647 = vlog2.f32 %v214_v13  ;;  %v223_v44 = vmax.f32 %v191_v33, 1e-06  ;;  %v224_v46 = vmax.f32 %v192_v37, 1e-06  ;;  %v225_v50 = vmax.f32 %v193_v39, 1e-06 }
  0x25   : > { %649 = vlog2.f32 %v215_v15  ;;  %v194_v51 = vld [vmem:[%s932_s28 + $0x88] sm:$0xff]  ;;  %v195_v57 = vld [vmem:[%s932_s28 + $0x90] sm:$0xff]  ;;  %v196_v63 = vld [vmem:[%s932_s28 + $0x98] sm:$0xff] }
  0x26   : > { %651 = vlog2.f32 %v216_v17  ;;  %v226_v62 = vmax.f32 %v194_v51, 1e-06  ;;  %v227_v4 = vmax.f32 %v195_v57, 1e-06  ;;  %v197_v5 = vld [vmem:[%s932_s28 + $0xa0] sm:$0xff]  ;;  %v198_v12 = vld [vmem:[%s932_s28 + $0xa8] sm:$0xff] }
  0x27   : > { %653 = vlog2.f32 %v217_v20  ;;  %v228_v10 = vmax.f32 %v196_v63, 1e-06  ;;  %v229_v17 = vmax.f32 %v197_v5, 1e-06  ;;  %v230_v24 = vmax.f32 %v198_v12, 1e-06 }
  0x28   : > { %655 = vlog2.f32 %v218_v25  ;;  %v200_v33 = vld [vmem:[%s932_s28 + $0xb8] sm:$0xff]  ;;  %v203_v57 = vld [vmem:[%s932_s28 + $0xd0] sm:$0xff] }
  0x29   : > { %v638_v19 = vpop.eup %637  ;;  %657 = vlog2.f32 %v219_v30 }
  0x2a   : > { %v640_v21 = vpop.eup %639  ;;  %v242_v27 = vmul.f32 0.6931472, %v638_v19  ;;  %659 = vlog2.f32 %v220_v34  ;;  %v199_v19 = vld [vmem:[%s932_s28 + $0xb0] sm:$0xff]  ;;  %v201_v34 = vld [vmem:[%s932_s28 + $0xc0] sm:$0xff] }
  0x2b   : > { %v642_v23 = vpop.eup %641  ;;  %v244_v31 = vmul.f32 0.6931472, %v640_v21  ;;  %661 = vlog2.f32 %v221_v38  ;;  %v231_v30 = vmax.f32 %v199_v19, 1e-06 }
  0x2c   : > { %v644_v28 = vpop.eup %643  ;;  %v246_v35 = vmul.f32 0.6931472, %v642_v23  ;;  %v306_v42 = vmul.f32 %v948_v32, %v242_v27  ;;  %663 = vlog2.f32 %v222_v40 }
  0x2d   : > { %v646_v36 = vpop.eup %645  ;;  %v248_v41 = vmul.f32 0.6931472, %v644_v28  ;;  %v307_v45 = vmul.f32 %v948_v32, %v244_v31  ;;  %665 = vlog2.f32 %v223_v44  ;;  %v232_v44 = vmax.f32 %v200_v33, 1e-06 }
  0x2e   : > { %v648_v43 = vpop.eup %647  ;;  %v250_v47 = vmul.f32 0.6931472, %v646_v36  ;;  %v308_v48 = vmul.f32 %v948_v32, %v246_v35  ;;  %v338_v54 = vmul.f32 1.442695, %v306_v42  ;;  %667 = vlog2.f32 %v224_v46 }
  0x2f   : > { %v650_v49 = vpop.eup %649  ;;  %v252_v52 = vmul.f32 0.6931472, %v648_v43  ;;  %v309_v53 = vmul.f32 %v948_v32, %v248_v41  ;;  %v340_v56 = vmul.f32 1.442695, %v307_v45  ;;  %669 = vlog2.f32 %v225_v50 }
  0x30   : > { %v652_v55 = vpop.eup %651  ;;  %v254_v58 = vmul.f32 0.6931472, %v650_v49  ;;  %v310_v59 = vmul.f32 %v948_v32, %v250_v47  ;;  %v342_v60 = vmul.f32 1.442695, %v308_v48  ;;  %671 = vpow2.f32 %v338_v54  ;;  %v202_v47 = vld [vmem:[%s932_s28 + $0xc8] sm:$0xff] }
  0x31   : > { %v654_v61 = vpop.eup %653  ;;  %v256_v0 = vmul.f32 0.6931472, %v652_v55  ;;  %v311_v1 = vmul.f32 %v948_v32, %v252_v52  ;;  %v344_v2 = vmul.f32 1.442695, %v309_v53  ;;  %673 = vpow2.f32 %v340_v56 }
  0x32   : > { %v656_v3 = vpop.eup %655  ;;  %v258_v6 = vmul.f32 0.6931472, %v654_v61  ;;  %v312_v7 = vmul.f32 %v948_v32, %v254_v58  ;;  %675 = vpow2.f32 %v342_v60  ;;  %v346_v8 = vmul.f32 1.442695, %v310_v59 }
  0x33   : > { %v658_v9 = vpop.eup %657  ;;  %677 = vlog2.f32 %v226_v62  ;;  %v260_v13 = vmul.f32 0.6931472, %v656_v3  ;;  %v313_v14 = vmul.f32 %v948_v32, %v256_v0  ;;  %v348_v15 = vmul.f32 1.442695, %v311_v1 }
  0x34   : > { %v660_v11 = vpop.eup %659  ;;  %679 = vpow2.f32 %v344_v2  ;;  %v262_v20 = vmul.f32 0.6931472, %v658_v9  ;;  %v314_v21 = vmul.f32 %v948_v32, %v258_v6  ;;  %v350_v22 = vmul.f32 1.442695, %v312_v7  ;;  %v204_v2 = vld [vmem:[%s932_s28 + $0xd8] sm:$0xff] }
  0x35   : > { %v662_v16 = vpop.eup %661  ;;  %681 = vlog2.f32 %v227_v4  ;;  %v264_v26 = vmul.f32 0.6931472, %v660_v11  ;;  %v315_v27 = vmul.f32 %v948_v32, %v260_v13  ;;  %v352_v28 = vmul.f32 1.442695, %v313_v14  ;;  %v205_v11 = vld [vmem:[%s932_s28 + $0xe0] sm:$0xff] }
  0x36   : > { %v664_v18 = vpop.eup %663  ;;  %683 = vpow2.f32 %v346_v8  ;;  %v266_v35 = vmul.f32 0.6931472, %v662_v16  ;;  %v316_v36 = vmul.f32 %v948_v32, %v262_v20  ;;  %v354_v37 = vmul.f32 1.442695, %v314_v21  ;;  %v206_v20 = vld [vmem:[%s932_s28 + $0xe8] sm:$0xff] }
  0x37   : > { %v666_v23 = vpop.eup %665  ;;  %685 = vlog2.f32 %v228_v10  ;;  %v268_v40 = vmul.f32 0.6931472, %v664_v18  ;;  %v317_v41 = vmul.f32 %v948_v32, %v264_v26  ;;  %v356_v42 = vmul.f32 1.442695, %v315_v27 }
  0x38   : > { %v668_v25 = vpop.eup %667  ;;  %687 = vpow2.f32 %v348_v15  ;;  %v233_v45 = vmax.f32 %v201_v34, 1e-06  ;;  %v270_v48 = vmul.f32 0.6931472, %v666_v23  ;;  %v318_v49 = vmul.f32 %v948_v32, %v266_v35 }
  0x39   : > { %v670_v29 = vpop.eup %669  ;;  %689 = vlog2.f32 %v229_v17  ;;  %v358_v50 = vmul.f32 1.442695, %v316_v36  ;;  %v272_v52 = vmul.f32 0.6931472, %v668_v25  ;;  %v319_v58 = vmul.f32 %v948_v32, %v268_v40 }
  0x3a   : > { %v672_v31 = vpop.eup %671  ;;  %691 = vpow2.f32 %v350_v22  ;;  %v360_v59 = vmul.f32 1.442695, %v317_v41  ;;  %v234_v62 = vmax.f32 %v202_v47, 1e-06  ;;  %v274_v63 = vmul.f32 0.6931472, %v670_v29 }
  0x3b   : > { %v674_v38 = vpop.eup %673  ;;  %693 = vlog2.f32 %v230_v24  ;;  %v404_v53 = vsel %vm403_vm1, %v672_v31, 0.0  ;;  %v320_v3 = vmul.f32 %v948_v32, %v270_v48  ;;  %v362_v4 = vmul.f32 1.442695, %v318_v49  ;;  %v207_v29 = vld [vmem:[%s932_s28 + $0xf0] sm:$0xff] }
  0x3c   : > { %v676_v39 = vpop.eup %675  ;;  %695 = vpow2.f32 %v352_v28  ;;  %v405_v54 = vsel %vm403_vm1, %v674_v38, 0.0  ;;  %v235_v7 = vmax.f32 %v203_v57, 1e-06  ;;  %v321_v12 = vmul.f32 %v948_v32, %v272_v52  ;;  %v208_v38 = vld [vmem:[%s932_s28 + $0xf8] sm:$0xff] }
  0x3d   : > { %v678_v43 = vpop.eup %677  ;;  %697 = vlog2.f32 %v231_v30  ;;  %v407_v55 = vsel %vm403_vm1, %v676_v39, 0.0  ;;  %v406_v60 = vadd.f32 %v405_v54, %v404_v53  ;;  %v364_v13 = vmul.f32 1.442695, %v319_v58 }
  0x3e   : > { %v680_v46 = vpop.eup %679  ;;  %699 = vpow2.f32 %v354_v37  ;;  %v276_v8 = vmul.f32 0.6931472, %v678_v43  ;;  %v236_v16 = vmax.f32 %v204_v2, 1e-06  ;;  %v322_v21 = vmul.f32 %v948_v32, %v274_v63 }
  0x3f   : > { %v682_v51 = vpop.eup %681  ;;  %701 = vpow2.f32 %v356_v42  ;;  %v409_v0 = vsel %vm403_vm1, %v680_v46, 0.0  ;;  %v408_v5 = vadd.f32 %v407_v55, %v406_v60  ;;  %v366_v22 = vmul.f32 1.442695, %v320_v3 }
  0x40   : > { %v684_v56 = vpop.eup %683  ;;  %703 = vlog2.f32 %v232_v44  ;;  %v278_v17 = vmul.f32 0.6931472, %v682_v51  ;;  %v237_v25 = vmax.f32 %v205_v11, 1e-06  ;;  %v323_v30 = vmul.f32 %v948_v32, %v276_v8 }
  0x41   : > { %v686_v61 = vpop.eup %685  ;;  %705 = vpow2.f32 %v358_v50  ;;  %v411_v9 = vsel %vm403_vm1, %v684_v56, 0.0  ;;  %v410_v14 = vadd.f32 %v409_v0, %v408_v5  ;;  %v368_v31 = vmul.f32 1.442695, %v321_v12 }
  0x42   : > { %v688_v1 = vpop.eup %687  ;;  %707 = vlog2.f32 %v233_v45  ;;  %v280_v26 = vmul.f32 0.6931472, %v686_v61  ;;  %v238_v34 = vmax.f32 %v206_v20, 1e-06  ;;  %v324_v39 = vmul.f32 %v948_v32, %v278_v17 }
  0x43   : > { %v690_v6 = vpop.eup %689  ;;  %709 = vpow2.f32 %v360_v59  ;;  %v413_v18 = vsel %vm403_vm1, %v688_v1, 0.0  ;;  %v412_v23 = vadd.f32 %v411_v9, %v410_v14  ;;  %v370_v40 = vmul.f32 1.442695, %v322_v21 }
  0x44   : > { %v692_v10 = vpop.eup %691  ;;  %711 = vlog2.f32 %v234_v62  ;;  %v282_v35 = vmul.f32 0.6931472, %v690_v6  ;;  %v239_v43 = vmax.f32 %v207_v29, 1e-06  ;;  %v325_v47 = vmul.f32 %v948_v32, %v280_v26 }
  0x45   : > { %v694_v15 = vpop.eup %693  ;;  %713 = vpow2.f32 %v362_v4  ;;  %v415_v27 = vsel %vm403_vm1, %v692_v10, 0.0  ;;  %v414_v33 = vadd.f32 %v413_v18, %v412_v23  ;;  %v372_v48 = vmul.f32 1.442695, %v323_v30 }
  0x46   : > { %v696_v19 = vpop.eup %695  ;;  %715 = vlog2.f32 %v235_v7  ;;  %v284_v44 = vmul.f32 0.6931472, %v694_v15  ;;  %v240_v51 = vmax.f32 %v208_v38, 1e-06  ;;  %v326_v55 = vmul.f32 %v948_v32, %v282_v35 }
  0x47   : > { %v698_v24 = vpop.eup %697  ;;  %717 = vpow2.f32 %v364_v13  ;;  %v417_v36 = vsel %vm403_vm1, %v696_v19, 0.0  ;;  %v416_v41 = vadd.f32 %v415_v27, %v414_v33  ;;  %v374_v56 = vmul.f32 1.442695, %v324_v39 }
  0x48   : > { %v700_v28 = vpop.eup %699  ;;  %719 = vlog2.f32 %v236_v16  ;;  %v286_v52 = vmul.f32 0.6931472, %v698_v24  ;;  %v327_v62 = vmul.f32 %v948_v32, %v284_v44  ;;  %v376_v63 = vmul.f32 1.442695, %v325_v47 }
  0x49   : > { %v702_v37 = vpop.eup %701  ;;  %721 = vpow2.f32 %v366_v22  ;;  %v419_v45 = vsel %vm403_vm1, %v700_v28, 0.0  ;;  %v418_v49 = vadd.f32 %v417_v36, %v416_v41  ;;  %v378_v6 = vmul.f32 1.442695, %v326_v55 }
  0x4a   : > { %v704_v42 = vpop.eup %703  ;;  %723 = vlog2.f32 %v237_v25  ;;  %v421_v53 = vsel %vm403_vm1, %v702_v37, 0.0  ;;  %v328_v5 = vmul.f32 %v948_v32, %v286_v52  ;;  %v380_v13 = vmul.f32 1.442695, %v327_v62 }
  0x4b   : > { %v706_v46 = vpop.eup %705  ;;  %725 = vpow2.f32 %v368_v31  ;;  %v420_v57 = vadd.f32 %v419_v45, %v418_v49  ;;  %v288_v59 = vmul.f32 0.6931472, %v704_v42 }
  0x4c   : > { %v708_v50 = vpop.eup %707  ;;  %727 = vlog2.f32 %v238_v34  ;;  %v423_v60 = vsel %vm403_vm1, %v706_v46, 0.0  ;;  %v382_v20 = vmul.f32 1.442695, %v328_v5 }
  0x4d   : > { %v710_v54 = vpop.eup %709  ;;  %729 = vpow2.f32 %v370_v40  ;;  %v422_v0 = vadd.f32 %v421_v53, %v420_v57  ;;  %v290_v2 = vmul.f32 0.6931472, %v708_v50  ;;  %v329_v12 = vmul.f32 %v948_v32, %v288_v59 }
  0x4e   : > { %v712_v58 = vpop.eup %711  ;;  %731 = vlog2.f32 %v239_v43  ;;  %v425_v3 = vsel %vm403_vm1, %v710_v54, 0.0 }
  0x4f   : > { %v714_v61 = vpop.eup %713  ;;  %733 = vpow2.f32 %v372_v48  ;;  %v424_v7 = vadd.f32 %v423_v60, %v422_v0  ;;  %v292_v9 = vmul.f32 0.6931472, %v712_v58  ;;  %v330_v19 = vmul.f32 %v948_v32, %v290_v2 }
  0x50   : > { %v716_v1 = vpop.eup %715  ;;  %735 = vlog2.f32 %v240_v51  ;;  %v427_v10 = vsel %vm403_vm1, %v714_v61, 0.0  ;;  %v384_v27 = vmul.f32 1.442695, %v329_v12 }
  0x51   : > { %v718_v4 = vpop.eup %717  ;;  %737 = vpow2.f32 %v374_v56  ;;  %v426_v14 = vadd.f32 %v425_v3, %v424_v7  ;;  %v294_v16 = vmul.f32 0.6931472, %v716_v1  ;;  %v331_v26 = vmul.f32 %v948_v32, %v292_v9 }
  0x52   : > { %v720_v8 = vpop.eup %719  ;;  %739 = vpow2.f32 %v376_v63  ;;  %v429_v17 = vsel %vm403_vm1, %v718_v4, 0.0  ;;  %v386_v35 = vmul.f32 1.442695, %v330_v19 }
  0x53   : > { %v722_v11 = vpop.eup %721  ;;  %741 = vpow2.f32 %v378_v6  ;;  %v428_v21 = vadd.f32 %v427_v10, %v426_v14  ;;  %v296_v23 = vmul.f32 0.6931472, %v720_v8  ;;  %v332_v34 = vmul.f32 %v948_v32, %v294_v16 }
  0x54   : > { %v724_v15 = vpop.eup %723  ;;  %v431_v24 = vsel %vm403_vm1, %v722_v11, 0.0  ;;  %743 = vpow2.f32 %v380_v13  ;;  %v388_v42 = vmul.f32 1.442695, %v331_v26 }
  0x55   : > { %v726_v18 = vpop.eup %725  ;;  %v430_v28 = vadd.f32 %v429_v17, %v428_v21  ;;  %v298_v30 = vmul.f32 0.6931472, %v724_v15  ;;  %745 = vpow2.f32 %v382_v20  ;;  %v333_v41 = vmul.f32 %v948_v32, %v296_v23 }
  0x56   : > { %v728_v22 = vpop.eup %727  ;;  %v433_v31 = vsel %vm403_vm1, %v726_v18, 0.0  ;;  %747 = vpow2.f32 %v384_v27  ;;  %v390_v48 = vmul.f32 1.442695, %v332_v34 }
  0x57   : > { %v730_v25 = vpop.eup %729  ;;  %v432_v36 = vadd.f32 %v431_v24, %v430_v28  ;;  %v300_v38 = vmul.f32 0.6931472, %v728_v22  ;;  %v334_v47 = vmul.f32 %v948_v32, %v298_v30  ;;  %749 = vpow2.f32 %v386_v35 }
  0x58   : > { %v732_v29 = vpop.eup %731  ;;  %v435_v39 = vsel %vm403_vm1, %v730_v25, 0.0  ;;  %751 = vpow2.f32 %v388_v42  ;;  %v392_v54 = vmul.f32 1.442695, %v333_v41  ;;  %v402_v42 = vld [vmem:[#allocation2] sm:$0x1] }
  0x59   : > { %v734_v33 = vpop.eup %733  ;;  %v434_v43 = vadd.f32 %v433_v31, %v432_v36  ;;  %v302_v44 = vmul.f32 0.6931472, %v732_v29  ;;  %v335_v53 = vmul.f32 %v948_v32, %v300_v38  ;;  %753 = vpow2.f32 %v390_v48 }
  0x5a   : > { %v736_v37 = vpop.eup %735  ;;  %v437_v45 = vsel %vm403_vm1, %v734_v33, 0.0  ;;  %v394_v59 = vmul.f32 1.442695, %v334_v47  ;;  %755 = vpow2.f32 %v392_v54 }
  0x5b   : > { %v738_v40 = vpop.eup %737  ;;  %v436_v49 = vadd.f32 %v435_v39, %v434_v43  ;;  %v304_v50 = vmul.f32 0.6931472, %v736_v37  ;;  %v336_v58 = vmul.f32 %v948_v32, %v302_v44  ;;  %v396_v0 = vmul.f32 1.442695, %v335_v53 }
  0x5c   : > { %v740_v46 = vpop.eup %739  ;;  %v439_v51 = vsel %vm403_vm1, %v738_v40, 0.0  ;;  %757 = vpow2.f32 %v394_v59 }
  0x5d   : > { %v742_v52 = vpop.eup %741  ;;  %v438_v55 = vadd.f32 %v437_v45, %v436_v49  ;;  %v441_v56 = vsel %vm403_vm1, %v740_v46, 0.0  ;;  %v337_v63 = vmul.f32 %v948_v32, %v304_v50  ;;  %v398_v4 = vmul.f32 1.442695, %v336_v58 }
  0x5e   : > { %v744_v57 = vpop.eup %743  ;;  %v443_v61 = vsel %vm403_vm1, %v742_v52, 0.0  ;;  %759 = vpow2.f32 %v396_v0 }
  0x5f   : > { %v440_v60 = vadd.f32 %v439_v51, %v438_v55  ;;  %v746_v62 = vpop.eup %745  ;;  %v445_v2 = vsel %vm403_vm1, %v744_v57, 0.0  ;;  %v400_v8 = vmul.f32 1.442695, %v337_v63  ;;  %761 = vpow2.f32 %v398_v4 }
  0x60   : > { %v748_v3 = vpop.eup %747  ;;  %v447_v6 = vsel %vm403_vm1, %v746_v62, 0.0 }
  0x61   : > { %v442_v1 = vadd.f32 %v441_v56, %v440_v60  ;;  %v750_v7 = vpop.eup %749  ;;  %v449_v10 = vsel %vm403_vm1, %v748_v3, 0.0  ;;  %763 = vpow2.f32 %v400_v8 }
  0x62   : > { %v752_v11 = vpop.eup %751  ;;  %v451_v13 = vsel %vm403_vm1, %v750_v7, 0.0  ;;  %765 = vrcp.f32 %v948_v32 }
  0x63   : > { %v444_v5 = vadd.f32 %v443_v61, %v442_v1  ;;  %v754_v14 = vpop.eup %753  ;;  %v453_v16 = vsel %vm403_vm1, %v752_v11, 0.0 }
  0x64   : > { %v756_v17 = vpop.eup %755  ;;  %v455_v19 = vsel %vm403_vm1, %v754_v14, 0.0 }
  0x65   : > { %v446_v9 = vadd.f32 %v445_v2, %v444_v5  ;;  %v457_v22 = vsel %vm403_vm1, %v756_v17, 0.0 }
  0x66   : > { %v758_v20 = vpop.eup %757 }
  0x67   : > { %v448_v12 = vadd.f32 %v447_v6, %v446_v9  ;;  %v459_v25 = vsel %vm403_vm1, %v758_v20, 0.0 }
  0x68   : > { %v760_v23 = vpop.eup %759 }
  0x69   : > { %v450_v15 = vadd.f32 %v449_v10, %v448_v12  ;;  %v762_v26 = vpop.eup %761  ;;  %v461_v28 = vsel %vm403_vm1, %v760_v23, 0.0 }
  0x6a   : > { %v463_v31 = vsel %vm403_vm1, %v762_v26, 0.0 }
  0x6b   : > { %v452_v18 = vadd.f32 %v451_v13, %v450_v15  ;;  %v764_v29 = vpop.eup %763 }
  0x6c   : > { %v465_v34 = vsel %vm403_vm1, %v764_v29, 0.0  ;;  %v766_v47 = vpop.eup %765 }
  0x6d   : > { %v454_v21 = vadd.f32 %v453_v16, %v452_v18 }
  0x6f   : > { %v456_v24 = vadd.f32 %v455_v19, %v454_v21 }
  0x71   : > { %v458_v27 = vadd.f32 %v457_v22, %v456_v24 }
  0x73   : > { %v460_v30 = vadd.f32 %v459_v25, %v458_v27 }
  0x75   : > { %v462_v33 = vadd.f32 %v461_v28, %v460_v30 }
  0x77   : > { %v464_v35 = vadd.f32 %v463_v31, %v462_v33 }
  0x79   : > { %v466_v36 = vadd.f32 %v465_v34, %v464_v35 }
  0x7b   : > { %v467_v37 = vrot.slane %v466_v36, 4 }
  0x7d   : > { %v468_v38 = vadd.f32 %v467_v37, %v466_v36 }
  0x7f   : > { %v469_v39 = vrot.slane %v468_v38, 2 }
  0x81   : > { %v470_v40 = vadd.f32 %v469_v39, %v468_v38 }
  0x83   : > { %v471_v41 = vrot.slane %v470_v40, 1 }
  0x85   : > { %v472_v43 = vadd.f32 %v471_v41, %v470_v40 }
  0x87   : > { %v473_v44 = vadd.f32 %v472_v43, %v402_v42 }
  0x89   : > { %475 = vst.msk [vmem:[#allocation2] sm:$0x1] %vm174_vm0, %v473_v44 }
  0x90   : > { %v479_v45 = vld [vmem:[#allocation2] sm:$0x1] }
  0x91   : > { %v480_v46 = vmul.f32 0.00390625, %v479_v45 }
  0x93   : > { %767 = vlog2.f32 %v480_v46 }
  0x9d   : > { %v768_v48 = vpop.eup %767 }
  0x9e   : > { %v482_v49 = vmul.f32 0.6931472, %v768_v48 }
  0xa0   : > { %v484_v50 = vmul.f32 %v766_v47, %v482_v49 }
  0xa2   : > { %v485_v51 = vmul.f32 1.442695, %v484_v50 }
  0xa4   : > { %769 = vpow2.f32 %v485_v51 }
  0xae   : > { %v770_v32 = vpop.eup %769 }
  0xaf   : > { %487 = vst.msk [vmem:[%s159_s4] sm:$0x1] %vm174_vm0, %v770_v32 }
  0xb0   : > { %784 = shalt.err (!%p781_p5)
}
  0xb1   : > { %s785_s19 = scalar_lea.hbm %s1039_s8, 16  ;;  %s789_s25 = scalar_lea.hbm %s1089_s2, 32 }
  0xb2   : > { %p786_p6 = scmp.ne.s32.totalorder %s1039_s8, %s785_s19  ;;  %p790_p10 = scmp.lt.u32.totalorder %s1039_s8, %s1089_s2 }
  0xb3   : > { %p791_p11 = scmp.lt.u32.totalorder %s789_s25, %s785_s19  ;;  %p793_p13 = scmp.lt.u32.totalorder %s785_s19, %s1039_s8 }
  0xb4   : > { %p787_p7 = pnand %p786_p6, %p911_p4 }
  0xb5   : > { %p792_p12 = por %p791_p11, %p790_p10 }
  0xb6   : > { %p788_p9 = pneg %p787_p7 }
  0xb7   : > { %p794_p0 = por %p793_p13, %p792_p12 }
  0xb9   : > { %p795_p1 = pnand %p794_p0, %p788_p9 }
  0xbb   : > { %798 = shalt.err (!%p795_p1)
}
  0xbc   : > { %581 = dma.vmem_to_hbm [thread:$0]  (%p911_p4), %s1041_s5, 16, %s1039_s8, %s489_s9  }
  0xbd PF: > { %p587_p2 = scmp.ge.s32.totalorder %s849_s16, 2  ;;  %s513_s28 = sand.u32 1, %s829_s11  }
  0xbe   : > { %s514_s29 = scalar_lea.sflag [#allocation5], %s513_s28 }
  0xbf   : > { %p584_p3 = pnand %p587_p2, %p918_p8 }
  0xc1   : > { %824 = dma.done.wait (!%p584_p3), %s514_s29, 16  }
  0xc2   : > { %826 = vsyncadd (!%p584_p3), %s514_s29, 4294967280  ;;  %s16_s16 = sadd.s32 1, %s849_s16   ;;  %s1092_s11 = smov %s833_s12 }
  0xc3   : > { %p13_p5 = scmp.ge.s32.totalorder %s16_s16, 4   ;;  %s1093_s12 = smov %s837_s13 }
  0xc4   : > { %s1094_s13 = smov %s924_s23  ;;  %s1095_s14 = smov %s845_s15 }
  0xc5   : > { %s1096_s15 = smov %s1098_s18  ;;  %15 = sbr.rel (!%p13_p5) target bundleno = 6 (0x6), region = 71 }
  0xcc   :  { %518 = vsyncpa [#allocation5], 1 }
  0xcd   :  { %520 = vsyncpa [#allocation5 + $0x1], 1 }

</bundles_post_ra>
